<compile_context>
chip_gen: v7x
topology: tpu7x:2x2x1
jax: 0.10.0
libtpu: 0.0.40
codegen_flags: <defaults>
</compile_context>

<pallas_src>
import numpy as np
import jax
import jax.numpy as jnp
from jax import lax
from jax.experimental import pallas as pl
from jax.experimental.pallas import tpu as pltpu

# ----------------------------------------------------------------------------
# Host-side "molecule" structure (ethanol CCO + explicit Hs), mirroring the
# reference module's orbital bookkeeping.
# ----------------------------------------------------------------------------
NW = 28                      # number of learnable weights (torch.randn(28, 1))
# atoms: C(SP3), C(SP3), O(SP3), 6 x H(UNSPECIFIED)
# orbital counts: 4, 4, 4, 1x6  ->  D = 18
D = 18
NROUNDS = D - 1              # parallel-Jacobi rounds per sweep (9 disjoint pivots each)
NSWEEPS = 10                 # sweeps (14 was conservative; 10 keeps margin at 1e-3)

# weight slots used (same indices as the reference module)
W_H_ES, W_C_ES, W_C_EP, W_O_ES, W_O_EP = 0, 1, 2, 5, 6
W_CCSIGMA, W_CHSIGMA, W_COSIGMA = 15, 16, 23


def build_basis():
    """Basis tensor B with c = sum_k w[k] * B[k], reproducing the reference."""
    B = np.zeros((NW, D, D), dtype=np.float32)

    # SP3 diagonal blocks: diag = es/4 + 3ep/4, off-diag = es/4 - ep/4
    def sp3_block(offset, k_es, k_ep):
        for i in range(4):
            for j in range(4):
                if i == j:
                    B[k_es, offset + i, offset + j] += 0.25
                    B[k_ep, offset + i, offset + j] += 0.75
                else:
                    B[k_es, offset + i, offset + j] += 0.25
                    B[k_ep, offset + i, offset + j] += -0.25

    sp3_block(0, W_C_ES, W_C_EP)    # C atom 0 -> orbitals 0..3
    sp3_block(4, W_C_ES, W_C_EP)    # C atom 1 -> orbitals 4..7
    sp3_block(8, W_O_ES, W_O_EP)    # O atom 2 -> orbitals 8..11

    # H atoms (UNSPECIFIED): 1x1 block [H_es], orbitals 12..17
    for i in range(12, 18):
        B[W_H_ES, i, i] += 1.0

    # Bond couplings, following the reference's pop()-based orbital assignment:
    #  edge order (0,1) (0,3) (0,4) (0,5) (1,2) (1,6) (1,7) (2,8[O-H: no case])
    sigma_pairs = [
        (3, 7, W_CCSIGMA),   # C0-C1
        (2, 12, W_CHSIGMA),  # C0-H3
        (1, 13, W_CHSIGMA),  # C0-H4
        (0, 14, W_CHSIGMA),  # C0-H5
        (6, 11, W_COSIGMA),  # C1-O2
        (5, 15, W_CHSIGMA),  # C1-H6
        (4, 16, W_CHSIGMA),  # C1-H7
    ]
    for i, j, k in sigma_pairs:
        B[k, i, j] += 1.0
        B[k, j, i] += 1.0
    return B


def build_jacobi_tables():
    """Precomputed per-round tables for round-robin parallel Jacobi.

    PS[r, i, j] = +1 if (i, j) is a pivot of round r with i < j,
                  -1 if (i, j) is a pivot of round r with i > j, 0 otherwise.
    PH[r]       = 0.5 * |PS[r]|                (mask for the symmetrized coupling)
    NM[r]       = sflag_r * (|PS[r]| - I)      so that (NM[r] "dot" diag(A))[i]
                  = A[q,q] - A[p,p] for BOTH members of the pivot (p, q).
    Each round pairs all D orbitals into D/2 disjoint pivots; the D-1 rounds of
    one sweep cover every (p, q) pair exactly once.
    """
    ps = np.zeros((NROUNDS, D, D), dtype=np.float32)
    rot = list(range(1, D))
    for r in range(NROUNDS):
        lineup = [0] + rot
        for k in range(D // 2):
            a, b = lineup[k], lineup[D - 1 - k]
            p, q = (a, b) if a < b else (b, a)
            ps[r, p, q] = 1.0
            ps[r, q, p] = -1.0
        rot = [rot[-1]] + rot[:-1]
    # every off-diagonal pair covered exactly once per sweep
    cover = np.abs(ps).sum(axis=0)
    assert np.array_equal(cover, np.ones((D, D), np.float32) - np.eye(D, dtype=np.float32))

    ph = 0.5 * np.abs(ps)
    nm = np.zeros_like(ps)
    eye = np.eye(D, dtype=np.float32)
    for r in range(NROUNDS):
        P = np.abs(ps[r])
        sflag = ps[r].sum(axis=1, keepdims=True)   # +1 if i < partner(i) else -1
        nm[r] = sflag * (P - eye)
    return ps.astype(np.float32), ph.astype(np.float32), nm.astype(np.float32)


# electron count: C -> 6-2=4 (x2), O -> 8-2=6, H -> 1 (x6)  =>  N = 20, n = 10
N_ELEC = 4 + 4 + 6 + 6
N_OCC = N_ELEC // 2          # = 10; output slice emo[n-4 : n+6] -> emo[6:16]


# ----------------------------------------------------------------------------
# Pallas kernel: parallel-ordered Jacobi eigensolve of the (18, 18) Hamiltonian.
# ----------------------------------------------------------------------------
def huckel_eig_kernel(c_ref, ps_ref, ph_ref, nm_ref, evals_ref):
    ii = lax.broadcasted_iota(jnp.int32, (D, D), 0)
    jj = lax.broadcasted_iota(jnp.int32, (D, D), 1)
    eye = (ii == jj).astype(jnp.float32)

    def round_body(r, A):
        # Per-round static structure: cheap VMEM loads, nothing recomputed.
        PS = ps_ref[r]                       # signed partner matrix      (D, D)
        PH = ph_ref[r]                       # 0.5 * partner mask         (D, D)
        NM = nm_ref[r]                       # diag-difference selector   (D, D)

        # diag(A) as a row vector (sublane reduction)
        dd_row = jnp.sum(A * eye, axis=0, keepdims=True)           # A[j,j]         (1,D)
        # a_qq - a_pp per row; bit-identical for both members of a pivot pair.
        num = jnp.sum(NM * dd_row, axis=1, keepdims=True)          # (D,1)

        # symmetrized coupling 0.5*(A[i,par(i)] + A[par(i),i]); the commutative
        # add makes it bit-identical for both pivot members, so the composed G
        # below is exactly of Givens form (Gt == G^T) even with f32 rounding.
        APH = A * PH
        od_col = jnp.sum(APH, axis=1, keepdims=True)               # 0.5*A[i,par(i)]   (D,1)
        od_row = jnp.sum(APH, axis=0, keepdims=True)               # 0.5*A[par(j),j]   (1,D)
        od_tcol = jnp.sum(eye * od_row, axis=1, keepdims=True)     # 0.5*A[par(i),i]   (D,1)
        od = od_col + od_tcol

        # classic Jacobi angle per pivot, computed for all 9 pairs at once
        abs_od = jnp.abs(od)
        do_rot = abs_od > 1e-12
        denom = jnp.where(do_rot, 2.0 * od, 1.0)
        tau = jnp.clip(num / denom, -1e8, 1e8)      # clamp: tau*tau never overflows
        sgn = jnp.where(tau >= 0.0, 1.0, -1.0)
        t = sgn / (jnp.abs(tau) + jnp.sqrt(1.0 + tau * tau))
        cth = lax.rsqrt(1.0 + t * t)                # EUP rsqrt
        sth = t * cth
        cth = jnp.where(do_rot, cth, 1.0)
        sth = jnp.where(do_rot, sth, 0.0)

        # Composed Givens rotation for all D/2 disjoint pivots of the round:
        #   G[p,p]=G[q,q]=c, G[p,q]=+s, G[q,p]=-s   for each pivot (p,q).
        G = eye * cth + PS * sth
        Gt = eye * cth - PS * sth
        return jnp.dot(
            jnp.dot(Gt, A, preferred_element_type=jnp.float32),
            G,
            preferred_element_type=jnp.float32,
        )

    def sweep_body(_, A):
        return lax.fori_loop(0, NROUNDS, round_body, A)

    A = lax.fori_loop(0, NSWEEPS, sweep_body, c_ref[...])

    # eigenvalues = diagonal of the (numerically) diagonalized matrix, lane-major
    evals_ref[...] = jnp.sum(A * eye, axis=0, keepdims=True)


def huckel_eigenvalues(c, ps, ph, nm):
    """Returns unsorted eigenvalues of the symmetric (D, D) matrix c as (1, D)."""
    return pl.pallas_call(
        huckel_eig_kernel,
        out_shape=jax.ShapeDtypeStruct((1, D), jnp.float32),
        in_specs=[
            pl.BlockSpec(memory_space=pltpu.MemorySpace.VMEM),  # c (Hamiltonian)
            pl.BlockSpec(memory_space=pltpu.MemorySpace.VMEM),  # PS
            pl.BlockSpec(memory_space=pltpu.MemorySpace.VMEM),  # PH
            pl.BlockSpec(memory_space=pltpu.MemorySpace.VMEM),  # NM
        ],
        out_specs=pl.BlockSpec(memory_space=pltpu.MemorySpace.VMEM),
    )(c, ps, ph, nm)


@jax.jit
def my_model_forward(w, basis, ps, ph, nm):
    """Mirrors MyModel.forward: c = c(w); emo, _ = eigh(c); return emo[n-4:n+6]."""
    # Hamiltonian assembly is linear in w; done in the XLA wrapper (off-kernel).
    c = jnp.einsum("k,kij->ij", w, basis)
    evals = huckel_eigenvalues(c, ps, ph, nm)[0]             # (D,)
    emo = jnp.sort(evals)                                    # ascending, as eigh
    return emo[N_OCC - 4 : N_OCC + 6]                        # 10 eigenvalues


if __name__ == "__main__":
    key = jax.random.PRNGKey(0)
    # deterministic stand-in for torch.nn.Parameter(torch.randn(28, 1))
    w = jax.random.normal(key, (NW,), dtype=jnp.float32)

    basis = jnp.asarray(build_basis())
    ps_np, ph_np, nm_np = build_jacobi_tables()
    ps, ph, nm = jnp.asarray(ps_np), jnp.asarray(ph_np), jnp.asarray(nm_np)

    out = my_model_forward(w, basis, ps, ph, nm)
    out = jax.block_until_ready(out)

    # sanity check against a plain-JAX eigh of the same Hamiltonian
    c_ref = jnp.einsum("k,kij->ij", w, basis)
    emo_ref = jnp.linalg.eigh(c_ref)[0][N_OCC - 4 : N_OCC + 6]
    np.testing.assert_allclose(np.asarray(out), np.asarray(emo_ref),
                               rtol=1e-3, atol=1e-3)

    assert out.shape == (10,)
    print("KERNEL_OK")
</pallas_src>

<mosaic_0001>
module attributes {stable_mosaic.version = 11 : i64} {
  func.func @huckel_eig_kernel(%arg0: memref<18x18xf32, #tpu.memory_space<vmem>>, %arg1: memref<17x18x18xf32, #tpu.memory_space<vmem>>, %arg2: memref<17x18x18xf32, #tpu.memory_space<vmem>>, %arg3: memref<17x18x18xf32, #tpu.memory_space<vmem>>, %arg4: memref<1x18xf32, #tpu.memory_space<vmem>>) attributes {dimension_semantics = [], scalar_prefetch = 0 : i64, scratch_operands = 0 : i64, tpu.core_type = #tpu.core_type<tc>} {
    %0 = tpu.iota {dimensions = array<i32: 0>} : vector<18x18xi32>
    %1 = tpu.iota {dimensions = array<i32: 1>} : vector<18x18xi32>
    %2 = arith.cmpi eq, %0, %1 : vector<18x18xi32>
    %3 = arith.extui %2 : vector<18x18xi1> to vector<18x18xi32>
    %4 = arith.sitofp %3 : vector<18x18xi32> to vector<18x18xf32>
    %c0 = arith.constant 0 : index
    %c0_0 = arith.constant 0 : index
    %5 = vector.load %arg0[%c0, %c0_0] : memref<18x18xf32, #tpu.memory_space<vmem>>, vector<18x18xf32>
    %c0_i32 = arith.constant 0 : i32
    %c10_i32 = arith.constant 10 : i32
    %6 = arith.addi %c0_i32, %c10_i32 : i32
    %c1_i32 = arith.constant 1 : i32
    %7 = scf.for %arg5 = %c0_i32 to %6 step %c1_i32 iter_args(%arg6 = %5) -> (vector<18x18xf32>)  : i32 {
      %c0_i32_3 = arith.constant 0 : i32
      %c17_i32 = arith.constant 17 : i32
      %12 = arith.addi %c0_i32_3, %c17_i32 : i32
      %c1_i32_4 = arith.constant 1 : i32
      %13 = scf.for %arg7 = %c0_i32_3 to %12 step %c1_i32_4 iter_args(%arg8 = %arg6) -> (vector<18x18xf32>)  : i32 {
        %14 = arith.index_cast %arg7 : i32 to index
        %c0_6 = arith.constant 0 : index
        %c0_7 = arith.constant 0 : index
        %15 = vector.load %arg1[%14, %c0_6, %c0_7] : memref<17x18x18xf32, #tpu.memory_space<vmem>>, vector<1x18x18xf32>
        %16 = vector.shape_cast %15 : vector<1x18x18xf32> to vector<18x18xf32>
        %17 = arith.index_cast %arg7 : i32 to index
        %c0_8 = arith.constant 0 : index
        %c0_9 = arith.constant 0 : index
        %18 = vector.load %arg2[%17, %c0_8, %c0_9] : memref<17x18x18xf32, #tpu.memory_space<vmem>>, vector<1x18x18xf32>
        %19 = vector.shape_cast %18 : vector<1x18x18xf32> to vector<18x18xf32>
        %20 = arith.index_cast %arg7 : i32 to index
        %c0_10 = arith.constant 0 : index
        %c0_11 = arith.constant 0 : index
        %21 = vector.load %arg3[%20, %c0_10, %c0_11] : memref<17x18x18xf32, #tpu.memory_space<vmem>>, vector<1x18x18xf32>
        %22 = vector.shape_cast %21 : vector<1x18x18xf32> to vector<18x18xf32>
        %23 = arith.mulf %arg8, %4 : vector<18x18xf32>
        %cst_12 = arith.constant dense<0.000000e+00> : vector<18xf32>
        %24 = vector.multi_reduction <add>, %23, %cst_12 [0] : vector<18x18xf32> to vector<18xf32>
        %25 = vector.shape_cast %24 : vector<18xf32> to vector<1x18xf32>
        %26 = vector.broadcast %25 : vector<1x18xf32> to vector<18x18xf32>
        %27 = arith.mulf %22, %26 : vector<18x18xf32>
        %cst_13 = arith.constant dense<0.000000e+00> : vector<18xf32>
        %28 = vector.multi_reduction <add>, %27, %cst_13 [1] : vector<18x18xf32> to vector<18xf32>
        %29 = vector.shape_cast %28 : vector<18xf32> to vector<18x1xf32>
        %30 = arith.mulf %arg8, %19 : vector<18x18xf32>
        %cst_14 = arith.constant dense<0.000000e+00> : vector<18xf32>
        %31 = vector.multi_reduction <add>, %30, %cst_14 [1] : vector<18x18xf32> to vector<18xf32>
        %32 = vector.shape_cast %31 : vector<18xf32> to vector<18x1xf32>
        %cst_15 = arith.constant dense<0.000000e+00> : vector<18xf32>
        %33 = vector.multi_reduction <add>, %30, %cst_15 [0] : vector<18x18xf32> to vector<18xf32>
        %34 = vector.shape_cast %33 : vector<18xf32> to vector<1x18xf32>
        %35 = vector.broadcast %34 : vector<1x18xf32> to vector<18x18xf32>
        %36 = arith.mulf %4, %35 : vector<18x18xf32>
        %cst_16 = arith.constant dense<0.000000e+00> : vector<18xf32>
        %37 = vector.multi_reduction <add>, %36, %cst_16 [1] : vector<18x18xf32> to vector<18xf32>
        %38 = vector.shape_cast %37 : vector<18xf32> to vector<18x1xf32>
        %39 = arith.addf %32, %38 : vector<18x1xf32>
        %40 = math.absf %39 : vector<18x1xf32>
        %cst_17 = arith.constant 9.99999996E-13 : f32
        %41 = vector.broadcast %cst_17 : f32 to vector<18x1xf32>
        %42 = arith.cmpf ogt, %40, %41 : vector<18x1xf32>
        %cst_18 = arith.constant 2.000000e+00 : f32
        %43 = vector.broadcast %cst_18 : f32 to vector<18x1xf32>
        %44 = arith.mulf %43, %39 : vector<18x1xf32>
        %cst_19 = arith.constant 1.000000e+00 : f32
        %45 = vector.broadcast %cst_19 : f32 to vector<18x1xf32>
        %46 = arith.select %42, %44, %45 : vector<18x1xi1>, vector<18x1xf32>
        %47 = arith.divf %29, %46 : vector<18x1xf32>
        %cst_20 = arith.constant -1.000000e+08 : f32
        %cst_21 = arith.constant 1.000000e+08 : f32
        %48 = vector.broadcast %cst_20 : f32 to vector<18x1xf32>
        %49 = arith.maximumf %48, %47 : vector<18x1xf32>
        %50 = vector.broadcast %cst_21 : f32 to vector<18x1xf32>
        %51 = arith.minimumf %50, %49 : vector<18x1xf32>
        %cst_22 = arith.constant 0.000000e+00 : f32
        %52 = vector.broadcast %cst_22 : f32 to vector<18x1xf32>
        %53 = arith.cmpf oge, %51, %52 : vector<18x1xf32>
        %cst_23 = arith.constant 1.000000e+00 : f32
        %cst_24 = arith.constant -1.000000e+00 : f32
        %54 = vector.broadcast %cst_23 : f32 to vector<18x1xf32>
        %55 = vector.broadcast %cst_24 : f32 to vector<18x1xf32>
        %56 = arith.select %53, %54, %55 : vector<18x1xi1>, vector<18x1xf32>
        %57 = math.absf %51 : vector<18x1xf32>
        %58 = arith.mulf %51, %51 : vector<18x1xf32>
        %cst_25 = arith.constant 1.000000e+00 : f32
        %59 = vector.broadcast %cst_25 : f32 to vector<18x1xf32>
        %60 = arith.addf %59, %58 : vector<18x1xf32>
        %61 = math.sqrt %60 : vector<18x1xf32>
        %62 = arith.addf %57, %61 : vector<18x1xf32>
        %63 = arith.divf %56, %62 : vector<18x1xf32>
        %64 = arith.mulf %63, %63 : vector<18x1xf32>
        %cst_26 = arith.constant 1.000000e+00 : f32
        %65 = vector.broadcast %cst_26 : f32 to vector<18x1xf32>
        %66 = arith.addf %65, %64 : vector<18x1xf32>
        %67 = math.rsqrt %66 : vector<18x1xf32>
        %68 = arith.mulf %63, %67 : vector<18x1xf32>
        %cst_27 = arith.constant 1.000000e+00 : f32
        %69 = vector.broadcast %cst_27 : f32 to vector<18x1xf32>
        %70 = arith.select %42, %67, %69 : vector<18x1xi1>, vector<18x1xf32>
        %cst_28 = arith.constant 0.000000e+00 : f32
        %71 = vector.broadcast %cst_28 : f32 to vector<18x1xf32>
        %72 = arith.select %42, %68, %71 : vector<18x1xi1>, vector<18x1xf32>
        %73 = vector.broadcast %70 : vector<18x1xf32> to vector<18x18xf32>
        %74 = arith.mulf %4, %73 : vector<18x18xf32>
        %75 = vector.broadcast %72 : vector<18x1xf32> to vector<18x18xf32>
        %76 = arith.mulf %16, %75 : vector<18x18xf32>
        %77 = arith.addf %74, %76 : vector<18x18xf32>
        %78 = vector.broadcast %70 : vector<18x1xf32> to vector<18x18xf32>
        %79 = arith.mulf %4, %78 : vector<18x18xf32>
        %80 = vector.broadcast %72 : vector<18x1xf32> to vector<18x18xf32>
        %81 = arith.mulf %16, %80 : vector<18x18xf32>
        %82 = arith.subf %79, %81 : vector<18x18xf32>
        %cst_29 = arith.constant dense<0.000000e+00> : vector<18x18xf32>
        %83 = tpu.matmul %82, %arg8, %cst_29 {dimension_numbers = #tpu.dot_dimension_numbers<[1], [0], [0], [1], [0, 0, 1, 1], [], []>} : vector<18x18xf32>, vector<18x18xf32>, vector<18x18xf32> -> vector<18x18xf32>
        %cst_30 = arith.constant dense<0.000000e+00> : vector<18x18xf32>
        %84 = tpu.matmul %83, %77, %cst_30 {dimension_numbers = #tpu.dot_dimension_numbers<[1], [0], [0], [1], [0, 0, 1, 1], [], []>} : vector<18x18xf32>, vector<18x18xf32>, vector<18x18xf32> -> vector<18x18xf32>
        scf.yield %84 : vector<18x18xf32>
      }
      %c17_i32_5 = arith.constant 17 : i32
      scf.yield %13 : vector<18x18xf32>
    }
    %8 = arith.mulf %7, %4 : vector<18x18xf32>
    %cst = arith.constant dense<0.000000e+00> : vector<18xf32>
    %9 = vector.multi_reduction <add>, %8, %cst [0] : vector<18x18xf32> to vector<18xf32>
    %10 = vector.shape_cast %9 : vector<18xf32> to vector<1x18xf32>
    %c0_1 = arith.constant 0 : index
    %c0_2 = arith.constant 0 : index
    %11 = vector.load %arg4[%c0_1, %c0_2] : memref<1x18xf32, #tpu.memory_space<vmem>>, vector<1x18xf32>
    tpu.vector_store %arg4[%c0_1, %c0_2], %10 {strides = array<i32>} : memref<1x18xf32, #tpu.memory_space<vmem>>, vector<1x18xf32>,
    return
  }
}

</mosaic_0001>

<bundles_post_ra>
// kernel: my_model_forward.1
= control target key start
LH: loop header
LB: loop body
LE: loop exit
PB: predicated region body
PF: predicated region fallthrough
CT: control target
= control target key end

     0   :  { %9 = vsyncpa [#allocation3], 0  ;;  %s995_s0 = inlined_call_operand.vmem [shape: f32[18,18], index: 0, kind: input, shape index: {}]   ;;  %s996_s1 = inlined_call_operand.vmem [shape: f32[17,18,18], index: 1, kind: input, shape index: {}]   ;;  %s997_s2 = inlined_call_operand.hbm [shape: f32[17,18,18], index: 2, kind: input, shape index: {}]   ;;  %s998_s3 = inlined_call_operand.hbm [shape: f32[17,18,18], index: 3, kind: input, shape index: {}]   ;;  %s999_s4 = inlined_call_operand.vmem [shape: f32[1,18], index: 4, kind: output, shape index: {}]  }
   0x1   :  { %10 = vsyncpa [#allocation5], 0  ;;  %s770_s15 = smov [#allocation2]   ;;  %s658_s19 = scalar_lea.hbm %s997_s2, 6528 }
   0x2   :  { %s20_s16 = sshll.u32 %s770_s15, 4  ;;  %p659_p0 = scmp.ne.s32.totalorder %s997_s2, %s658_s19  ;;  %s21_s16 = int_to_ptr.vmem [resolvable:$true] %s20_s16 }
   0x3   :  { %p662_p1 = scmp.lt.u32.totalorder %s658_s19, %s997_s2 }
   0x5   :  { %p664_p2 = pnand %p662_p1, %p659_p0 }
   0x7   :  { %667 = shalt.err (!%p664_p2)
}
   0x8   :  { %s668_s24 = scalar_lea.vmem %s21_s16, 6528  ;;  %p673_p4 = scmp.lt.s32.totalorder %s21_s16, %s21_s16 }
   0x9   :  { %p669_p3 = scmp.ne.s32.totalorder %s21_s16, %s668_s24  ;;  %p674_p5 = scmp.lt.s32.totalorder %s668_s24, %s668_s24 }
   0xb   :  { %p675_p6 = por %p674_p5, %p673_p4 }
   0xd   :  { %p676_p7 = pnand %p675_p6, %p669_p3 }
   0xf   :  { %679 = shalt.err (!%p676_p7)
}
  0x10   :  { %s771_s25 = smov 128   ;;  %s772_s26 = smov 8  }
  0x11   :  { %26 = dma.hbm_to_vmem [thread:$0]  %s997_s2, 6528, %s21_s16, [#allocation3], %s771_s25, %s771_s25, %s772_s26  }
  0x12   :  { %s773_s29 = smov [#allocation4]   ;;  %s680_s7 = scalar_lea.hbm %s998_s3, 6528 }
  0x13   :  { %s32_s30 = sshll.u32 %s773_s29, 4  ;;  %p681_p8 = scmp.ne.s32.totalorder %s998_s3, %s680_s7  ;;  %s33_s30 = int_to_ptr.vmem [resolvable:$true] %s32_s30 }
  0x14   :  { %p684_p9 = scmp.lt.u32.totalorder %s680_s7, %s998_s3 }
  0x16   :  { %p686_p10 = pnand %p684_p9, %p681_p8 }
  0x18   :  { %689 = shalt.err (!%p686_p10)
}
  0x19   :  { %s690_s12 = scalar_lea.vmem %s33_s30, 6528  ;;  %p695_p12 = scmp.lt.s32.totalorder %s33_s30, %s33_s30 }
  0x1a   :  { %p691_p11 = scmp.ne.s32.totalorder %s33_s30, %s690_s12  ;;  %p696_p13 = scmp.lt.s32.totalorder %s690_s12, %s690_s12 }
  0x1c   :  { %p697_p0 = por %p696_p13, %p695_p12 }
  0x1e   :  { %p698_p1 = pnand %p697_p0, %p691_p11 }
  0x20   :  { %701 = shalt.err (!%p698_p1)
}
  0x21   :  { %38 = dma.hbm_to_vmem [thread:$0]  %s998_s3, 6528, %s33_s30, [#allocation5], %s771_s25, %s771_s25, %s772_s26  }
  0x22   :  { %734 = dma.done.wait [#allocation3], 6528  }
  0x23   :  { %735 = vsyncadd [#allocation3], 4294960768 }
  0x24   :  { %736 = dma.done.wait [#allocation5], 6528  }
  0x25   :  { %737 = vsyncadd [#allocation5], 4294960768  ;;  %v45_v0 = vlaneseq  ;;  %v774_v5 = vmov 0.0   ;;  %v60_v7 = vld [vmem:[%s995_s0] sm:$0xff]   ;;  %v61_v8 = vld [vmem:[%s995_s0 + $0x8] sm:$0xff]   ;;  %s849_s19 = smov 0  }
  0x26   :  { %v62_v9 = vld [vmem:[%s995_s0 + $0x10] sm:$0x3]  }
  0x27   :  { %v46_v1 = vshrl.u32 %v45_v0, 7  ;;  %v50_v2 = vand.u32 127, %v45_v0 }
  0x29   :  { %v47_v3 = vadd.s32 8, %v46_v1  ;;  %v48_v4 = vadd.s32 16, %v46_v1  ;;  %vm51_vm0 = vcmp.eq.s32.totalorder %v46_v1, %v50_v2 }
  0x2a   :  { %v828_v6 = vsel %vm51_vm0, 1.0, %v774_v5 }
  0x2b   :  { %vm52_vm1 = vcmp.eq.s32.totalorder %v47_v3, %v50_v2  ;;  %vm53_vm2 = vcmp.eq.s32.totalorder %v48_v4, %v50_v2 }
  0x2c   :  { %v839_v10 = vsel %vm52_vm1, 1.0, %v774_v5  ;;  %v841_v11 = vsel %vm53_vm2, 1.0, %v774_v5 }
  0x2d LB: > { %s863_s0 = smov 0   ;;  %s752_s19 = sphi %s849_s19, %s68_s19   ;;  %v748_v7 = vphi %v60_v7, %v1011_v7   ;;  %v744_v8 = vphi %v61_v8, %v1010_v8   ;;  %v740_v9 = vphi %v62_v9, %v1009_v9  }
  0x2e LB: >> { %s878_s20 = smul.u32 24, %s768_s0  ;;  %v94_v12 = vmul.f32 %v764_v7, %v828_v6  ;;  %v95_v13 = vmul.f32 %v760_v8, %v839_v10  ;;  %vm97_vm3 = vcmask 146432   ;;  %v96_v14 = vmul.f32 %v756_v9, %v841_v11  ;;  %s77_s0 = sadd.s32 1, %s768_s0   ;;  %s768_s0 = sphi %s863_s0, %s77_s0   ;;  %v764_v7 = vphi %v748_v7, %v1008_v7   ;;  %v760_v8 = vphi %v744_v8, %v1007_v8   ;;  %v756_v9 = vphi %v740_v9, %v1006_v9  }
  0x2f   : >> { %vm101_vm4 = vcmask 140288   ;;  %v556_v58 = vpack.c.bf16 %v760_v8, %v764_v7  ;;  %v775_v59 = vmov 0.0|0.0   ;;  %vm265_vm5 = vcmask 1041408   ;;  %p74_p2 = scmp.ge.s32.totalorder %s77_s0, 17  }
  0x30   : >> { %v98_v15 = vsel %vm97_vm3, %v94_v12, 0.0  ;;  %v99_v16 = vsel %vm97_vm3, %v95_v13, 0.0  ;;  %s86_s21 = scalar_lea.vmem [#allocation2], %s878_s20  ;;  %v102_v21 = vsel %vm101_vm4, %v96_v14, 0.0  ;;  %s90_s22 = scalar_lea.vmem [#allocation4], %s878_s20  ;;  %555 = vmatprep.subr.bf16.mxu0 %v775_v59  ;;  %558 = vmatprep.subr.bf16.mxu1 %v775_v59  ;;  %v776_v60 = vmov 0.0  }
  0x31   : >> { %v87_v17 = vld [vmem:[%s86_s21] sm:$0xff]  ;;  %v88_v18 = vld [vmem:[%s86_s21 + $0x8] sm:$0xff]  ;;  %v89_v19 = vld [vmem:[%s86_s21 + $0x10] sm:$0x3]  ;;  %v100_v20 = vadd.f32 %v99_v16, %v98_v15  ;;  %557 = vmatpush3.bf16.msra.mxu0 %v556_v58  ;;  %vm777_vm6 = vmmov 0   ;;  %s82_s25 = scalar_lea.vmem %s996_s1, %s878_s20  ;;  %s68_s19 = sadd.s32 (%p74_p2), 1, %s752_s19  }
  0x32   : >> { %v122_v22 = vmul.f32 %v764_v7, %v87_v17  ;;  %v123_v23 = vmul.f32 %v760_v8, %v88_v18  ;;  %v124_v24 = vmul.f32 %v756_v9, %v89_v19  ;;  %v92_v46 = vld [vmem:[%s90_s22 + $0x8] sm:$0xff]  ;;  %v91_v47 = vld [vmem:[%s90_s22] sm:$0xff]  ;;  %v93_v53 = vld [vmem:[%s90_s22 + $0x10] sm:$0x3]  ;;  %529 = vmatprep.subr.mxu0 %v776_v60  ;;  %531 = vmatprep.mubr.msk.f32.mxu0 %vm777_vm6, %v776_v60  ;;  %p65_p3 = scmp.ge.s32.totalorder (%p74_p2), %s68_s19, 10  }
  0x33   : >> { %v103_v25 = vadd.f32 %v102_v21, %v100_v20  ;;  %546 = vmatprep.mubr.msk.f32.mxu1 %vm777_vm6, %v776_v60 }
  0x34   : >> { %v125_v26 = vsel %vm97_vm3, %v122_v22, 0.0  ;;  %v128_v27 = vsel %vm97_vm3, %v123_v23, 0.0  ;;  %v131_v28 = vsel %vm101_vm4, %v124_v24, 0.0 }
  0x35   : >> { %126 = vadd.xlane.f32.xlu0 %v125_v26  ;;  %129 = vadd.xlane.f32.xlu1 %v128_v27  ;;  %v134_v29 = vadd.f32 %v128_v27, %v125_v26  ;;  %v104_v30 = vrot.slane %v103_v25, 4 }
  0x36   : >> { %530 = vmatpush3.msk.msra.mxu0 %vm265_vm5, %v756_v9 }
  0x37   : >> { %v135_v31 = vadd.f32 %v134_v29, %v131_v28  ;;  %v105_v32 = vadd.f32 %v104_v30, %v103_v25 }
  0x39   : >> { %v136_v33 = vrot.slane %v135_v31, 4  ;;  %v106_v34 = vrot.slane %v105_v32, 2 }
  0x3b   : >> { %v137_v35 = vadd.f32 %v136_v33, %v135_v31  ;;  %v107_v37 = vadd.f32 %v106_v34, %v105_v32 }
  0x3d   : >> { %v138_v36 = vrot.slane %v137_v35, 2  ;;  %v108_v40 = vrot.slane %v107_v37, 1 }
  0x3f   : >> { %v139_v38 = vadd.f32 %v138_v36, %v137_v35  ;;  %v109_v45 = vadd.f32 %v108_v40, %v107_v37 }
  0x41   : >> { %v140_v39 = vrot.slane %v139_v38, 1  ;;  %v111_v51 = vmul.f32 %v109_v45, %v92_v46  ;;  %v110_v52 = vmul.f32 %v109_v45, %v91_v47  ;;  %v112_v56 = vmul.f32 %v109_v45, %v93_v53 }
  0x43   : >> { %v141_v41 = vadd.f32 %v140_v39, %v139_v38  ;;  %v116_v54 = vsel %vm97_vm3, %v111_v51, 0.0  ;;  %v113_v55 = vsel %vm97_vm3, %v110_v52, 0.0  ;;  %v119_v57 = vsel %vm101_vm4, %v112_v56, 0.0 }
  0x45   : >> { %v143_v42 = vmul.f32 %v839_v10, %v141_v41  ;;  %v142_v43 = vmul.f32 %v828_v6, %v141_v41  ;;  %v144_v44 = vmul.f32 %v841_v11, %v141_v41 }
  0x47   : >> { %v148_v48 = vsel %vm97_vm3, %v143_v42, 0.0  ;;  %v145_v49 = vsel %vm97_vm3, %v142_v43, 0.0  ;;  %v151_v50 = vsel %vm101_vm4, %v144_v44, 0.0 }
  0x48   : >> { %149 = vadd.xlane.f32.xlu1 %v148_v48  ;;  %146 = vadd.xlane.f32.xlu0 %v145_v49 }
  0x4c   : >> { %152 = vadd.xlane.f32.xlu1 %v151_v50  ;;  %132 = vadd.xlane.f32.xlu0 %v131_v28 }
  0x50   : >> { %117 = vadd.xlane.f32.xlu1 %v116_v54  ;;  %114 = vadd.xlane.f32.xlu0 %v113_v55 }
  0x54   : >> { %120 = vadd.xlane.f32.xlu0 %v119_v57 }
  0xc2   : >> { %v127_v61 = vpop.xlane.xlu0 %126  ;;  %v130_v62 = vpop.xlane.xlu1 %129 }
  0xd5   : >> { %v150_v63 = vpop.xlane.xlu1 %149  ;;  %v147_v0 = vpop.xlane.xlu0 %146 }
  0xd6   : >> { %v155_v1 = vadd.f32 %v150_v63, %v130_v62  ;;  %v154_v2 = vadd.f32 %v147_v0, %v127_v61  ;;  %v778_v62 = vmov -1.0  }
  0xd8   : >> { %v158_v3 = vand.u32 2147483647, %v155_v1  ;;  %v164_v4 = vmul.f32 2.0, %v155_v1  ;;  %v157_v5 = vand.u32 2147483647, %v154_v2  ;;  %v163_v7 = vmul.f32 2.0, %v154_v2 }
  0xd9   : >> { %v153_v8 = vpop.xlane.xlu1 %152  ;;  %v133_v12 = vpop.xlane.xlu0 %132 }
  0xda   : >> { %vm915_vm7 = vcmp.gt.f32.partialorder %v158_v3, 1e-12  ;;  %vm919_vm8 = vcmp.gt.f32.partialorder %v157_v5, 1e-12  ;;  %v156_v14 = vadd.f32 %v153_v8, %v133_v12 }
  0xdb   : >> { %v167_v15 = vsel %vm915_vm7, %v164_v4, 1.0  ;;  %v166_v16 = vsel %vm919_vm8, %v163_v7, 1.0 }
  0xdc   : >> { %634 = vrcp.f32 %v167_v15  ;;  %v159_v17 = vand.u32 2147483647, %v156_v14  ;;  %v165_v18 = vmul.f32 2.0, %v156_v14 }
  0xdd   : >> { %636 = vrcp.f32 %v166_v16  ;;  %v115_v21 = vpop.xlane.xlu0 %114  ;;  %v118_v22 = vpop.xlane.xlu1 %117 }
  0xde   : >> { %vm927_vm9 = vcmp.gt.f32.partialorder %v159_v17, 1e-12 }
  0xdf   : >> { %v168_v20 = vsel %vm927_vm9, %v165_v18, 1.0 }
  0xe0   : >> { %638 = vrcp.f32 %v168_v20 }
  0xe1   : >> { %v121_v27 = vpop.xlane.xlu0 %120 }
  0xe6   : >> { %v635_v23 = vpop.eup %634 }
  0xe7   : >> { %v637_v24 = vpop.eup %636  ;;  %v172_v25 = vmul.f32 %v635_v23, %v118_v22 }
  0xe8   : >> { %v170_v26 = vmul.f32 %v637_v24, %v115_v21  ;;  %v84_v21 = vld [vmem:[%s82_s25 + $0x8] sm:$0xff] }
  0xe9   : >> { %v503_v28 = vclamps-f32 %v172_v25, 1e+08  ;;  %v83_v25 = vld [vmem:[%s82_s25] sm:$0xff] }
  0xea   : >> { %v639_v29 = vpop.eup %638  ;;  %v502_v30 = vclamps-f32 %v170_v26, 1e+08 }
  0xeb   : >> { %v191_v31 = vmul.f32 %v503_v28, %v503_v28  ;;  %v174_v32 = vmul.f32 %v639_v29, %v121_v27  ;;  %v188_v42 = vand.u32 2147483647, %v503_v28  ;;  %vm182_vm0 = vcmp.ge.f32.partialorder %v503_v28, 0.0 }
  0xec   : >> { %v190_v33 = vmul.f32 %v502_v30, %v502_v30  ;;  %v187_v48 = vand.u32 2147483647, %v502_v30  ;;  %vm181_vm1 = vcmp.ge.f32.partialorder %v502_v30, 0.0  ;;  %v185_v63 = vsel %vm182_vm0, 1.0, %v778_v62 }
  0xed   : >> { %v194_v34 = vadd.f32 1.0, %v191_v31  ;;  %v504_v35 = vclamps-f32 %v174_v32, 1e+08  ;;  %v184_v2 = vsel %vm181_vm1, 1.0, %v778_v62 }
  0xee   : >> { %v193_v36 = vadd.f32 1.0, %v190_v33 }
  0xef   : >> { %640 = vrsqrt.f32 %v194_v34  ;;  %v192_v37 = vmul.f32 %v504_v35, %v504_v35  ;;  %vm205_vm10 = vcmp.eq.f32.partialorder %v194_v34, inf  ;;  %v208_v43 = vand.u32 2147483648, %v194_v34 }
  0xf0   : >> { %642 = vrsqrt.f32 %v193_v36  ;;  %vm207_vm11 = vcmp.eq.f32.partialorder %v194_v34, 0.0  ;;  %vm198_vm12 = vcmp.eq.f32.partialorder %v193_v36, inf  ;;  %v201_v46 = vand.u32 2147483648, %v193_v36 }
  0xf1   : >> { %v195_v38 = vadd.f32 1.0, %v192_v37  ;;  %vm200_vm13 = vcmp.eq.f32.partialorder %v193_v36, 0.0  ;;  %v189_v56 = vand.u32 2147483647, %v504_v35  ;;  %vm183_vm2 = vcmp.ge.f32.partialorder %v504_v35, 0.0 }
  0xf2   : >> { %v186_v14 = vsel %vm183_vm2, 1.0, %v778_v62 }
  0xf3   : >> { %644 = vrsqrt.f32 %v195_v38  ;;  %vm212_vm14 = vcmp.eq.f32.partialorder %v195_v38, inf  ;;  %v215_v55 = vand.u32 2147483648, %v195_v38  ;;  %vm214_vm15 = vcmp.eq.f32.partialorder %v195_v38, 0.0 }
  0xf9   : >> { %v641_v39 = vpop.eup %640 }
  0xfa   : >> { %v643_v40 = vpop.eup %642  ;;  %v204_v41 = vmul.f32 %v641_v39, %v194_v34 }
  0xfb   : >> { %v197_v44 = vmul.f32 %v643_v40, %v193_v36 }
  0xfc   : >> { %v206_v45 = vsel %vm205_vm10, %v194_v34, %v204_v41 }
  0xfd   : >> { %v209_v47 = vsel %vm207_vm11, %v208_v43, %v206_v45  ;;  %v199_v49 = vsel %vm198_vm12, %v193_v36, %v197_v44  ;;  %v645_v52 = vpop.eup %644 }
  0xfe   : >> { %v218_v50 = vadd.f32 %v209_v47, %v188_v42  ;;  %v202_v51 = vsel %vm200_vm13, %v201_v46, %v199_v49  ;;  %v211_v54 = vmul.f32 %v645_v52, %v195_v38 }
  0xff   : >> { %v217_v53 = vadd.f32 %v202_v51, %v187_v48 }
 0x100   : >> { %646 = vrcp.f32 %v218_v50  ;;  %v213_v57 = vsel %vm212_vm14, %v195_v38, %v211_v54  ;;  %v85_v38 = vld [vmem:[%s82_s25 + $0x10] sm:$0x3] }
 0x101   : >> { %648 = vrcp.f32 %v217_v53  ;;  %v216_v58 = vsel %vm214_vm15, %v215_v55, %v213_v57 }
 0x102   : >> { %v219_v59 = vadd.f32 %v216_v58, %v189_v56 }
 0x104   : >> { %650 = vrcp.f32 %v219_v59 }
 0x10a   : >> { %v647_v61 = vpop.eup %646 }
 0x10b   : >> { %v649_v0 = vpop.eup %648  ;;  %v223_v1 = vmul.f32 %v647_v61, %v185_v63 }
 0x10c   : >> { %v221_v3 = vmul.f32 %v649_v0, %v184_v2 }
 0x10d   : >> { %v227_v4 = vmul.f32 %v223_v1, %v223_v1 }
 0x10e   : >> { %v226_v5 = vmul.f32 %v221_v3, %v221_v3  ;;  %v651_v8 = vpop.eup %650 }
 0x10f   : >> { %v230_v7 = vadd.f32 1.0, %v227_v4  ;;  %v225_v15 = vmul.f32 %v651_v8, %v186_v14 }
 0x110   : >> { %v229_v12 = vadd.f32 1.0, %v226_v5 }
 0x111   : >> { %652 = vrsqrt.f32 %v230_v7  ;;  %v228_v16 = vmul.f32 %v225_v15, %v225_v15 }
 0x112   : >> { %654 = vrsqrt.f32 %v229_v12 }
 0x113   : >> { %v231_v17 = vadd.f32 1.0, %v228_v16 }
 0x115   : >> { %656 = vrsqrt.f32 %v231_v17 }
 0x11b   : >> { %v653_v18 = vpop.eup %652 }
 0x11c   : >> { %v655_v20 = vpop.eup %654  ;;  %v236_v22 = vmul.f32 %v653_v18, %v223_v1  ;;  %v239_v23 = vsel %vm915_vm7, %v653_v18, 1.0 }
 0x11d   : >> { %v235_v24 = vmul.f32 %v655_v20, %v221_v3  ;;  %v238_v26 = vsel %vm919_vm8, %v655_v20, 1.0  ;;  %v245_v29 = vmul.f32 %v839_v10, %v239_v23 }
 0x11e   : >> { %v242_v27 = vsel %vm915_vm7, %v236_v22, 0.0  ;;  %v244_v31 = vmul.f32 %v828_v6, %v238_v26 }
 0x11f   : >> { %v241_v28 = vsel %vm919_vm8, %v235_v24, 0.0  ;;  %v248_v30 = vmul.f32 %v242_v27, %v84_v21  ;;  %v657_v33 = vpop.eup %656 }
 0x120   : >> { %v247_v32 = vmul.f32 %v241_v28, %v83_v25  ;;  %v237_v35 = vmul.f32 %v657_v33, %v225_v15  ;;  %v240_v39 = vsel %vm927_vm9, %v657_v33, 1.0 }
 0x121   : >> { %v251_v34 = vadd.f32 %v248_v30, %v245_v29  ;;  %v254_v41 = vsub.f32 %v245_v29, %v248_v30  ;;  %v246_v42 = vmul.f32 %v841_v11, %v240_v39 }
 0x122   : >> { %v253_v36 = vsub.f32 %v244_v31, %v247_v32  ;;  %v250_v37 = vadd.f32 %v247_v32, %v244_v31  ;;  %v243_v9 = vsel %vm927_vm9, %v237_v35, 0.0 }
 0x123   : >> { %v249_v40 = vmul.f32 %v243_v9, %v85_v38 }
 0x124   : >> { %532 = vmatmul.mubr.msk.f32.vlgmr.msra.gmra.mrb[0].mxu0 %vm97_vm3, %v253_v36  ;;  %v559_v13 = vpack.c.bf16 %v251_v34, %v250_v37 }
 0x125   : >> { %534 = vmatprep.mubr.msk.f32.mxu0 %vm777_vm6, %v776_v60  ;;  %v252_v43 = vadd.f32 %v249_v40, %v246_v42  ;;  %v255_v19 = vsub.f32 %v246_v42, %v249_v40 }
 0x126   : >> { %560 = vmatpush3.bf16.msra.mxu1 %v559_v13 }
 0x127   : >> { %544 = vmatprep.subr.mxu1 %v776_v60 }
 0x128   : >> { %535 = vmatmul.mubr.msk.f32.gmra.mrb[2].mxu0 %vm97_vm3, %v254_v41 }
 0x129   : >> { %537 = vmatprep.mubr.msk.f32.mxu0 %vm777_vm6, %v776_v60 }
 0x12a   : >> { %545 = vmatpush3.msk.msra.mxu1 %vm265_vm5, %v252_v43 }
 0x12c   : >> { %538 = vmatmul.mubr.msk.f32.gmra.mrb[4].mxu0 %vm97_vm3, %v255_v19 }
 0x1f7   : >> { %v335_v44 = vpop.f32.mrb[0].mxu0 }
 0x1f8   : >> { %v533_v45 = vpop.f32.mrb[1].mxu0  ;;  %547 = vmatmul.mubr.msk.f32.vlgmr.msra.gmra.mrb[0].mxu1 %vm97_vm3, %v335_v44 }
 0x1f9   : >> { %549 = vmatprep.mubr.msk.f32.mxu1 %vm777_vm6, %v776_v60 }
 0x1fb   : >> { %v340_v46 = vpop.f32.mrb[2].mxu0 }
 0x1fc   : >> { %v536_v47 = vpop.f32.mrb[3].mxu0  ;;  %550 = vmatmul.mubr.msk.f32.gmra.mrb[2].mxu1 %vm97_vm3, %v340_v46 }
 0x1fd   : >> { %552 = vmatprep.mubr.msk.f32.mxu1 %vm777_vm6, %v776_v60 }
 0x1ff   : >> { %v345_v48 = vpop.f32.mrb[4].mxu0 }
 0x200   : >> { %v539_v49 = vpop.f32.mrb[5].mxu0  ;;  %553 = vmatmul.mubr.msk.f32.gmra.mrb[4].mxu1 %vm97_vm3, %v345_v48 }
 0x2cb   : >> { %v427_v50 = vpop.f32.mrb[0].mxu1  }
 0x2cc   : >> { %v548_v51 = vpop.f32.mrb[1].mxu1  ;;  %v1008_v7 = vmov %v427_v50 }
 0x2cd   : > { %v1011_v7 = vmov (%p74_p2), %v427_v50 }
 0x2ce   : > { %76 = sbr.rel (!%p74_p2) target bundleno = 46 (0x2e), region = 61 }
 0x2cf   : >> { %v432_v52 = vpop.f32.mrb[2].mxu1  }
 0x2d0   : >> { %v551_v53 = vpop.f32.mrb[3].mxu1  ;;  %v1007_v8 = vmov %v432_v52 }
 0x2d1   : > { %v1010_v8 = vmov (%p74_p2), %v432_v52 }
 0x2d3   : >> { %v437_v54 = vpop.f32.mrb[4].mxu1  }
 0x2d4   : >> { %v554_v55 = vpop.f32.mrb[5].mxu1  ;;  %v1006_v9 = vmov %v437_v54 }
 0x2d5   : > { %v1009_v9 = vmov %v437_v54  ;;  %67 = sbr.rel (!%p65_p3) target bundleno = 45 (0x2d), region = 72  ;;  %v441_v60 = vmul.f32 (%p65_p3), %v828_v6, %v427_v50  ;;  %v442_v56 = vmul.f32 (%p65_p3), %v839_v10, %v432_v52  ;;  %v443_v57 = vmul.f32 (%p65_p3), %v841_v11, %v437_v54 }
 0x2d6   :  { %vm457_vm5 = vcmask (%p65_p3), 139264  }
 0x2d7   :  { %v445_v58 = vsel (%p65_p3), %vm97_vm3, %v441_v60, 0.0  ;;  %v446_v59 = vsel (%p65_p3), %vm97_vm3, %v442_v56, 0.0  ;;  %v449_v61 = vsel (%p65_p3), %vm101_vm4, %v443_v57, 0.0 }
 0x2d8   :  { %v447_v62 = vadd.f32 (%p65_p3), %v446_v59, %v445_v58 }
 0x2da   :  { %v450_v63 = vadd.f32 (%p65_p3), %v449_v61, %v447_v62 }
 0x2dc   :  { %v451_v0 = vrot.slane %v450_v63, 4 }
 0x2de   :  { %v452_v1 = vadd.f32 %v451_v0, %v450_v63 }
 0x2e0   :  { %v453_v2 = vrot.slane %v452_v1, 2 }
 0x2e2   :  { %v454_v3 = vadd.f32 %v453_v2, %v452_v1 }
 0x2e4   :  { %v455_v4 = vrot.slane %v454_v3, 1 }
 0x2e6   :  { %v456_v5 = vadd.f32 %v455_v4, %v454_v3 }
 0x2e8   :  { %458 = vst.msk [vmem:[%s999_s4] sm:$0x1] %vm457_vm5, %v456_v5 }
 0x2e9   :  { %463 = vsyncpa [#allocation3], 1 }
 0x2ea   :  { %464 = vsyncpa [#allocation5], 1 }

</bundles_post_ra>
